<compile_context>
chip_gen: v7x
topology: tpu7x:2x2x1
jax: 0.10.0
libtpu: 0.0.40
codegen_flags: <defaults>
</compile_context>

<pallas_src>
import jax
import jax.numpy as jnp
from jax import lax
from jax.experimental import pallas as pl
from jax.experimental.pallas import tpu as pltpu


NEG_SLOPE = 0.01  # nn.LeakyReLU default negative_slope


def _leaky_relu(x):
    # max form: mul+max (2 VPU ops/elt) vs where's cmp+select+mul (3 ops/elt).
    return jnp.maximum(x, NEG_SLOPE * x)


def mlp_kernel(x_ref, w1_ref, b1_ref, w2_ref, b2_ref, w3_ref, b3_ref, w4_ref, o_ref):
    # x_ref: (tile_m, E) f32, natural row-major layout (contiguous DMA).
    # Cast to bf16 in-kernel (halves HBM read traffic vs a wrapper-side cast pass).
    x = x_ref[...].astype(jnp.bfloat16)

    # Layer 1: contract on E with dot_general so the MXU does the transpose.
    # (H1, E) x (tile_m, E) -> (H1, tile_m): batch stays on the lane axis.
    h = lax.dot_general(
        w1_ref[...], x,
        dimension_numbers=(((1,), (1,)), ((), ())),
        preferred_element_type=jnp.float32,
    ) + b1_ref[...]
    h = _leaky_relu(h)                       # Dropout (eval) = identity

    # Layer 2: (H2, H1) @ (H1, tile_m) -> (H2, tile_m)
    h = jnp.dot(w2_ref[...], h.astype(jnp.bfloat16),
                preferred_element_type=jnp.float32) + b2_ref[...]
    h = _leaky_relu(h)

    # Layer 3: (H3, H2) @ (H2, tile_m) -> (H3, tile_m)
    h = jnp.dot(w3_ref[...], h.astype(jnp.bfloat16),
                preferred_element_type=jnp.float32) + b3_ref[...]
    h = _leaky_relu(h)

    # Layer 4 (out width 1, no bias): VPU multiply + sublane (XLU) reduce instead
    # of a 1-column MXU matmul.  Result is lane-dense: (1, tile_m).
    logits = jnp.sum(h * w4_ref[...], axis=0, keepdims=True)

    # Exact sigmoid (passes 1e-4 tolerance).  On v7x, approx=True moves the
    # reciprocal to the otherwise-idle EUP slot at ~1e-3-class error.
    o_ref[...] = pl.reciprocal(1.0 + jnp.exp(-logits), approx=False).astype(o_ref.dtype)


def _default_tile_m(N):
    if N <= 1024:
        return N  # collapse the grid for small batches (single lane-dense tile)
    # Large N: big lane-dense tiles (multiple of 128), capped at 4096 and sized
    # so the grid has >= 2 steps -> both v7x TensorCores get work via the
    # "parallel" dimension semantics.  Sweep 4096-8192 if compute-bound.
    half = -(-(-(-N // 2)) // 128) * 128      # round_up(ceil(N/2), 128)
    return min(4096, half)


def mlp_forward(x, params, *, tile_m=None):
    """x: [N, E] float32 (natural row-major layout).  params: dict of
    weights/biases (PyTorch [out, in] layout, weights bf16, biases f32 columns).
    Returns [N, 1] float32."""
    N, E = x.shape
    w1, b1, w2, b2, w3, b3, w4 = (
        params["w1"], params["b1"], params["w2"], params["b2"],
        params["w3"], params["b3"], params["w4"],
    )
    H1, H2, H3 = w1.shape[0], w2.shape[0], w3.shape[0]

    if tile_m is None:
        tile_m = _default_tile_m(N)
    grid = (pl.cdiv(N, tile_m),)

    # Weights/biases are tiny -> resident full blocks.
    full = lambda shape: pl.BlockSpec(shape, lambda i: (0, 0))

    out_row = pl.pallas_call(
        mlp_kernel,
        out_shape=jax.ShapeDtypeStruct((1, N), jnp.float32),
        grid_spec=pltpu.PrefetchScalarGridSpec(
            num_scalar_prefetch=0,
            grid=grid,
            in_specs=[
                # Natural [N, E] tile; partial last tile reads padded rows, which
                # is safe (no cross-lane ops; padded output columns are clipped).
                # If profiling shows exposed DMA gaps, add pipeline_mode=pl.Buffered(3).
                pl.BlockSpec((tile_m, E), lambda i: (i, 0)),
                full((H1, E)), full((H1, 1)),
                full((H2, H1)), full((H2, 1)),
                full((H3, H2)), full((H3, 1)),
                full((H3, 1)),                                  # w4 as column (f32)
            ],
            out_specs=pl.BlockSpec((1, tile_m), lambda i: (0, i)),  # lane-dense output
        ),
        compiler_params=pltpu.CompilerParams(
            dimension_semantics=("parallel",),
            vmem_limit_bytes=32 * 1024 * 1024,
        ),
    )(x, w1, b1, w2, b2, w3, b3, w4)

    # (1, N) -> (N, 1): pure layout plumbing outside the kernel.
    return out_row.reshape(N, 1)


def init_mlp_params(key, embedding_size):
    """Xavier-uniform weights (zero biases), matching the PyTorch init.
    Weights stored in PyTorch [out, in] layout (bf16); biases as (out, 1) f32
    columns; final layer stored as an (H3, 1) f32 column (bias=False)."""
    E = embedding_size
    dims = [E, E // 2, E // 4, E // 6, 1]

    def xavier(k, fan_out, fan_in):
        bound = (6.0 / (fan_in + fan_out)) ** 0.5
        return jax.random.uniform(k, (fan_out, fan_in), jnp.float32, -bound, bound)

    k1, k2, k3, k4 = jax.random.split(key, 4)
    params = {
        "w1": xavier(k1, dims[1], dims[0]).astype(jnp.bfloat16),
        "b1": jnp.zeros((dims[1], 1), jnp.float32),
        "w2": xavier(k2, dims[2], dims[1]).astype(jnp.bfloat16),
        "b2": jnp.zeros((dims[2], 1), jnp.float32),
        "w3": xavier(k3, dims[3], dims[2]).astype(jnp.bfloat16),
        "b3": jnp.zeros((dims[3], 1), jnp.float32),
        # torch weight is (1, H3); store its transpose as a column for the in-kernel reduce.
        "w4": xavier(k4, dims[4], dims[3]).T,   # (H3, 1) f32
    }
    return params


def mlp_reference(x, params):
    """Pure-JAX reference (same bf16-input / f32-accumulation math, standard layout)."""
    f32 = jnp.float32
    h = _leaky_relu(jnp.dot(x.astype(jnp.bfloat16), params["w1"].T,
                            preferred_element_type=f32) + params["b1"].T)
    h = _leaky_relu(jnp.dot(h.astype(jnp.bfloat16), params["w2"].T,
                            preferred_element_type=f32) + params["b2"].T)
    h = _leaky_relu(jnp.dot(h.astype(jnp.bfloat16), params["w3"].T,
                            preferred_element_type=f32) + params["b3"].T)
    logits = jnp.sum(h * params["w4"].T, axis=-1, keepdims=True)   # (N, 1)
    return 1.0 / (1.0 + jnp.exp(-logits))


if __name__ == "__main__":
    embedding_size = 48          # E//2=24, E//4=12, E//6=8
    N = 64                       # number of (disease, microbe) pair embeddings

    key = jax.random.PRNGKey(0)
    kx, kp = jax.random.split(key)
    x = jax.random.normal(kx, (N, embedding_size), dtype=jnp.float32)
    params = init_mlp_params(kp, embedding_size)

    out = mlp_forward(x, params)          # grid collapses to (1,) at this size
    out = jax.block_until_ready(out)

    ref = mlp_reference(x, params)
    assert out.shape == (N, 1)
    assert jnp.allclose(out, ref, atol=1e-4, rtol=1e-4), "mismatch vs reference"

    print("KERNEL_OK")
</pallas_src>

<mosaic_0001>
module attributes {stable_mosaic.version = 11 : i64} {
  func.func @mlp_kernel(%arg0: i32, %arg1: memref<64x48xf32, #tpu.memory_space<vmem>>, %arg2: memref<24x48xbf16, #tpu.memory_space<vmem>>, %arg3: memref<24x1xf32, #tpu.memory_space<vmem>>, %arg4: memref<12x24xbf16, #tpu.memory_space<vmem>>, %arg5: memref<12x1xf32, #tpu.memory_space<vmem>>, %arg6: memref<8x12xbf16, #tpu.memory_space<vmem>>, %arg7: memref<8x1xf32, #tpu.memory_space<vmem>>, %arg8: memref<8x1xf32, #tpu.memory_space<vmem>>, %arg9: memref<1x64xf32, #tpu.memory_space<vmem>>) attributes {dimension_semantics = [#tpu.dimension_semantics<parallel>], iteration_bounds = array<i64: 1>, scalar_prefetch = 0 : i64, scratch_operands = 0 : i64, tpu.core_type = #tpu.core_type<tc>, window_params = [{transform_indices = @transform_0, window_bounds = array<i64: 64, 48>}, {pipeline_mode = #tpu.pipeline_mode<synchronous>, transform_indices = @transform_1, window_bounds = array<i64: 24, 48>}, {pipeline_mode = #tpu.pipeline_mode<synchronous>, transform_indices = @transform_2, window_bounds = array<i64: 24, 1>}, {pipeline_mode = #tpu.pipeline_mode<synchronous>, transform_indices = @transform_3, window_bounds = array<i64: 12, 24>}, {pipeline_mode = #tpu.pipeline_mode<synchronous>, transform_indices = @transform_4, window_bounds = array<i64: 12, 1>}, {pipeline_mode = #tpu.pipeline_mode<synchronous>, transform_indices = @transform_5, window_bounds = array<i64: 8, 12>}, {pipeline_mode = #tpu.pipeline_mode<synchronous>, transform_indices = @transform_6, window_bounds = array<i64: 8, 1>}, {pipeline_mode = #tpu.pipeline_mode<synchronous>, transform_indices = @transform_7, window_bounds = array<i64: 8, 1>}, {transform_indices = @transform_8, window_bounds = array<i64: 1, 64>}]} {
    %c0 = arith.constant 0 : index
    %c0_0 = arith.constant 0 : index
    %0 = vector.load %arg1[%c0, %c0_0] : memref<64x48xf32, #tpu.memory_space<vmem>>, vector<64x48xf32>
    %1 = arith.truncf %0 : vector<64x48xf32> to vector<64x48xbf16>
    %c0_1 = arith.constant 0 : index
    %c0_2 = arith.constant 0 : index
    %2 = vector.load %arg2[%c0_1, %c0_2] : memref<24x48xbf16, #tpu.memory_space<vmem>>, vector<24x48xbf16>
    %cst = arith.constant dense<0.000000e+00> : vector<24x64xf32>
    %3 = tpu.matmul %2, %1, %cst {dimension_numbers = #tpu.dot_dimension_numbers<[1], [1], [0], [0], [0, 0, 1, 0], [], []>} : vector<24x48xbf16>, vector<64x48xbf16>, vector<24x64xf32> -> vector<24x64xf32>
    %c0_3 = arith.constant 0 : index
    %c0_4 = arith.constant 0 : index
    %4 = vector.load %arg3[%c0_3, %c0_4] : memref<24x1xf32, #tpu.memory_space<vmem>>, vector<24x1xf32>
    %5 = vector.broadcast %4 : vector<24x1xf32> to vector<24x64xf32>
    %6 = arith.addf %3, %5 : vector<24x64xf32>
    %cst_5 = arith.constant 0.00999999977 : f32
    %7 = vector.broadcast %cst_5 : f32 to vector<24x64xf32>
    %8 = arith.mulf %7, %6 : vector<24x64xf32>
    %9 = arith.maximumf %6, %8 : vector<24x64xf32>
    %c0_6 = arith.constant 0 : index
    %c0_7 = arith.constant 0 : index
    %10 = vector.load %arg4[%c0_6, %c0_7] : memref<12x24xbf16, #tpu.memory_space<vmem>>, vector<12x24xbf16>
    %11 = arith.truncf %9 : vector<24x64xf32> to vector<24x64xbf16>
    %cst_8 = arith.constant dense<0.000000e+00> : vector<12x64xf32>
    %12 = tpu.matmul %10, %11, %cst_8 {dimension_numbers = #tpu.dot_dimension_numbers<[1], [0], [0], [1], [0, 0, 1, 1], [], []>} : vector<12x24xbf16>, vector<24x64xbf16>, vector<12x64xf32> -> vector<12x64xf32>
    %c0_9 = arith.constant 0 : index
    %c0_10 = arith.constant 0 : index
    %13 = vector.load %arg5[%c0_9, %c0_10] : memref<12x1xf32, #tpu.memory_space<vmem>>, vector<12x1xf32>
    %14 = vector.broadcast %13 : vector<12x1xf32> to vector<12x64xf32>
    %15 = arith.addf %12, %14 : vector<12x64xf32>
    %cst_11 = arith.constant 0.00999999977 : f32
    %16 = vector.broadcast %cst_11 : f32 to vector<12x64xf32>
    %17 = arith.mulf %16, %15 : vector<12x64xf32>
    %18 = arith.maximumf %15, %17 : vector<12x64xf32>
    %c0_12 = arith.constant 0 : index
    %c0_13 = arith.constant 0 : index
    %19 = vector.load %arg6[%c0_12, %c0_13] : memref<8x12xbf16, #tpu.memory_space<vmem>>, vector<8x12xbf16>
    %20 = arith.truncf %18 : vector<12x64xf32> to vector<12x64xbf16>
    %cst_14 = arith.constant dense<0.000000e+00> : vector<8x64xf32>
    %21 = tpu.matmul %19, %20, %cst_14 {dimension_numbers = #tpu.dot_dimension_numbers<[1], [0], [0], [1], [0, 0, 1, 1], [], []>} : vector<8x12xbf16>, vector<12x64xbf16>, vector<8x64xf32> -> vector<8x64xf32>
    %c0_15 = arith.constant 0 : index
    %c0_16 = arith.constant 0 : index
    %22 = vector.load %arg7[%c0_15, %c0_16] : memref<8x1xf32, #tpu.memory_space<vmem>>, vector<8x1xf32>
    %23 = vector.broadcast %22 : vector<8x1xf32> to vector<8x64xf32>
    %24 = arith.addf %21, %23 : vector<8x64xf32>
    %cst_17 = arith.constant 0.00999999977 : f32
    %25 = vector.broadcast %cst_17 : f32 to vector<8x64xf32>
    %26 = arith.mulf %25, %24 : vector<8x64xf32>
    %27 = arith.maximumf %24, %26 : vector<8x64xf32>
    %c0_18 = arith.constant 0 : index
    %c0_19 = arith.constant 0 : index
    %28 = vector.load %arg8[%c0_18, %c0_19] : memref<8x1xf32, #tpu.memory_space<vmem>>, vector<8x1xf32>
    %29 = vector.broadcast %28 : vector<8x1xf32> to vector<8x64xf32>
    %30 = arith.mulf %27, %29 : vector<8x64xf32>
    %cst_20 = arith.constant dense<0.000000e+00> : vector<64xf32>
    %31 = vector.multi_reduction <add>, %30, %cst_20 [0] : vector<8x64xf32> to vector<64xf32>
    %32 = vector.shape_cast %31 : vector<64xf32> to vector<1x64xf32>
    %cst_21 = arith.constant 0.000000e+00 : f32
    %33 = vector.broadcast %cst_21 : f32 to vector<1x64xf32>
    %34 = arith.subf %33, %32 : vector<1x64xf32>
    %35 = math.exp %34 : vector<1x64xf32>
    %cst_22 = arith.constant 1.000000e+00 : f32
    %36 = vector.broadcast %cst_22 : f32 to vector<1x64xf32>
    %37 = arith.addf %36, %35 : vector<1x64xf32>
    %38 = tpu.reciprocal %37 : vector<1x64xf32> -> vector<1x64xf32>
    %c0_23 = arith.constant 0 : index
    %c0_24 = arith.constant 0 : index
    %39 = vector.load %arg9[%c0_23, %c0_24] : memref<1x64xf32, #tpu.memory_space<vmem>>, vector<1x64xf32>
    tpu.vector_store %arg9[%c0_23, %c0_24], %38 {strides = array<i32>} : memref<1x64xf32, #tpu.memory_space<vmem>>, vector<1x64xf32>,
    return
  }
  func.func @transform_0(%arg0: i32) -> (i32, i32) {
    %c0_i32 = arith.constant 0 : i32
    %c0_i32_0 = arith.constant 0 : i32
    return %arg0, %c0_i32 : i32, i32
  }
  func.func @transform_1(%arg0: i32) -> (i32, i32) {
    %c0_i32 = arith.constant 0 : i32
    %c0_i32_0 = arith.constant 0 : i32
    %c0_i32_1 = arith.constant 0 : i32
    return %c0_i32, %c0_i32_0 : i32, i32
  }
  func.func @transform_2(%arg0: i32) -> (i32, i32) {
    %c0_i32 = arith.constant 0 : i32
    %c0_i32_0 = arith.constant 0 : i32
    %c0_i32_1 = arith.constant 0 : i32
    return %c0_i32, %c0_i32_0 : i32, i32
  }
  func.func @transform_3(%arg0: i32) -> (i32, i32) {
    %c0_i32 = arith.constant 0 : i32
    %c0_i32_0 = arith.constant 0 : i32
    %c0_i32_1 = arith.constant 0 : i32
    return %c0_i32, %c0_i32_0 : i32, i32
  }
  func.func @transform_4(%arg0: i32) -> (i32, i32) {
    %c0_i32 = arith.constant 0 : i32
    %c0_i32_0 = arith.constant 0 : i32
    %c0_i32_1 = arith.constant 0 : i32
    return %c0_i32, %c0_i32_0 : i32, i32
  }
  func.func @transform_5(%arg0: i32) -> (i32, i32) {
    %c0_i32 = arith.constant 0 : i32
    %c0_i32_0 = arith.constant 0 : i32
    %c0_i32_1 = arith.constant 0 : i32
    return %c0_i32, %c0_i32_0 : i32, i32
  }
  func.func @transform_6(%arg0: i32) -> (i32, i32) {
    %c0_i32 = arith.constant 0 : i32
    %c0_i32_0 = arith.constant 0 : i32
    %c0_i32_1 = arith.constant 0 : i32
    return %c0_i32, %c0_i32_0 : i32, i32
  }
  func.func @transform_7(%arg0: i32) -> (i32, i32) {
    %c0_i32 = arith.constant 0 : i32
    %c0_i32_0 = arith.constant 0 : i32
    %c0_i32_1 = arith.constant 0 : i32
    return %c0_i32, %c0_i32_0 : i32, i32
  }
  func.func @transform_8(%arg0: i32) -> (i32, i32) {
    %c0_i32 = arith.constant 0 : i32
    %c0_i32_0 = arith.constant 0 : i32
    return %c0_i32, %arg0 : i32, i32
  }
}

</mosaic_0001>

<bundles_post_ra>
// kernel: tpu_custom_call.1
= control target key start
LH: loop header
LB: loop body
LE: loop exit
PB: predicated region body
PF: predicated region fallthrough
CT: control target
= control target key end

     0   :  { %vm72_vm0 = vcmask 392192   ;;  %v398_v5 = vmov 0   ;;  %s528_s0 = inlined_call_operand.vmem [shape: f32[64,48], index: 0, kind: input, shape index: {}]   ;;  %s529_s1 = inlined_call_operand.vmem [shape: bf16[24,48], index: 1, kind: input, shape index: {}]   ;;  %s530_s2 = inlined_call_operand.vmem [shape: f32[24,1], index: 2, kind: input, shape index: {}]   ;;  %s531_s3 = inlined_call_operand.vmem [shape: bf16[12,24], index: 3, kind: input, shape index: {}]   ;;  %s532_s4 = inlined_call_operand.vmem [shape: f32[12,1], index: 4, kind: input, shape index: {}]   ;;  %s533_s5 = inlined_call_operand.vmem [shape: bf16[8,12], index: 5, kind: input, shape index: {}]   ;;  %s534_s6 = inlined_call_operand.vmem [shape: f32[8,1], index: 6, kind: input, shape index: {}]   ;;  %s535_s7 = inlined_call_operand.vmem [shape: f32[8,1], index: 7, kind: input, shape index: {}]   ;;  %s536_s8 = inlined_call_operand.hbm [shape: f32[1,64], index: 8, kind: output, shape index: {}]  }
   0x1   :  { %v31_v0 = vld [vmem:[%s528_s0] sm:$0xff]  ;;  %v32_v1 = vld [vmem:[%s528_s0 + $0x8] sm:$0xff]  ;;  %v33_v2 = vld [vmem:[%s528_s0 + $0x10] sm:$0xff]  ;;  %365 = vset.pattern.permute.xlu0 %v398_v5  ;;  %366 = vset.pattern.permute.xlu1 %v398_v5 }
   0x2   :  { %v39_v3 = vpack.c.bf16 %v32_v1, %v31_v0  ;;  %v34_v4 = vld [vmem:[%s528_s0 + $0x18] sm:$0xff]  ;;  %v367_v8 = vld [vmem:[%s529_s1] sm:$0xff]   ;;  %v48_v11 = vld [vmem:[%s530_s2 + $0x10] sm:$0xff] }
   0x3   :  { %v40_v6 = vpack.c.bf16 %v34_v4, %v33_v2  ;;  %v46_v9 = vld [vmem:[%s530_s2] sm:$0xff]  ;;  %339 = vmatprep.mubr.msk.bf16.mxu0 %vm72_vm0, %v367_v8  ;;  %v36_v12 = vld [vmem:[%s528_s0 + $0x28] sm:$0xff]  ;;  %61 = vperm.xlu1 %366, %v48_v11  }
   0x4   :  { %357 = vmatprep.subr.msk.bf16.mxu0 %vm72_vm0, %v39_v3  ;;  %v80_v7 = vsel %vm72_vm0, %v39_v3, 0  ;;  %v35_v10 = vld [vmem:[%s528_s0 + $0x20] sm:$0xff]  ;;  %51 = vperm.xlu0 %365, %v46_v9   ;;  %v47_v13 = vld [vmem:[%s530_s2 + $0x8] sm:$0xff] }
   0x5   :  { %332 = vmatpush3.bf16.xpose.msra.mxu0 %v80_v7  ;;  %v149_v14 = vld [vmem:[%s532_s4] sm:$0xff] }
   0x6   :  { %358 = vmatprep.subr.msk.bf16.mxu0 %vm72_vm0, %v40_v6 }
   0x7   :  { %13 = vsyncpa [#allocation3], 0  ;;  %v83_v15 = vsel %vm72_vm0, %v40_v6, 0  ;;  %v41_v16 = vpack.c.bf16 %v36_v12, %v35_v10  ;;  %153 = vperm.xlu1 %366, %v149_v14   ;;  %v150_v17 = vld [vmem:[%s532_s4 + $0x8] sm:$0xf]  ;;  %v221_v18 = vld [vmem:[%s534_s6] sm:$0xff] }
   0x8   :  { %56 = vperm.xlu0 %365, %v47_v13   ;;  %v37_v19 = vld [vmem:[%s528_s0 + $0x30] sm:$0xff]  ;;  %v38_v20 = vld [vmem:[%s528_s0 + $0x38] sm:$0xff]  ;;  %v277_v21 = vld [vmem:[%s535_s7] sm:$0xff]  ;;  %v399_v26 = vmov 0.0   ;;  %vm400_vm1 = vmmov 0   ;;  %vm170_vm2 = vcmask 1043456  }
   0x9   :  { %v86_v22 = vsel %vm72_vm0, %v41_v16, 0  ;;  %v42_v23 = vpack.c.bf16 %v38_v20, %v37_v19  ;;  %v368_v25 = vld [vmem:[%s529_s1 + $0x8] ss:$0 sps:$4 sm:$0xff]   ;;  %343 = vmatprep.subr.bf16.mxu1 %v399_v26  ;;  %347 = vmatprep.mubr.msk.bf16.mxu1 %vm400_vm1, %v399_v26  ;;  %v369_v46 = vld [vmem:[%s531_s3] sm:$0x3f]   ;;  %vm166_vm3 = vcmask 195584  }
   0xa   :  { %vm231_vm4 = vcmask 1045504   ;;  %v219_v61 = vld [vmem:[%s533_s5] sm:$0xf]  ;;  %vm227_vm5 = vcmask 97280   ;;  %vm284_vm6 = vcmask 523264   ;;  %s401_s5 = smov [#allocation2]  }
   0xb   :  { %224 = vperm.xlu1 %366, %v221_v18   ;;  %v89_v24 = vsel %vm72_vm0, %v42_v23, 0  ;;  %s305_s14 = sshll.u32 %s401_s5, 4  ;;  %vm297_vm7 = vcmask 516096   ;;  %s306_s14 = int_to_ptr.vmem [resolvable:$true] %s305_s14 }
   0xc   :  { %158 = vperm.xlu0 %365, %v150_v17   ;;  %s374_s15 = scalar_lea.vmem %s306_s14, 16  ;;  %s378_s16 = scalar_lea.vmem %s306_s14, 32 }
   0xd   :  { %334 = vmatpush3.bf16.xpose.msra.mxu0 %v83_v15  ;;  %p375_p0 = scmp.ne.s32.totalorder %s306_s14, %s374_s15  ;;  %p379_p1 = scmp.lt.s32.totalorder %s306_s14, %s306_s14 }
   0xe   :  { %359 = vmatprep.subr.msk.bf16.mxu0 %vm72_vm0, %v41_v16  ;;  %p380_p2 = scmp.lt.s32.totalorder %s378_s16, %s374_s15 }
  0x10   :  { %280 = vperm.xlu0 %365, %v277_v21   ;;  %p381_p3 = por %p380_p2, %p379_p1 }
  0x12   :  { %p382_p4 = pnand %p381_p3, %p375_p0 }
  0x15   :  { %336 = vmatpush3.bf16.xpose.msra.mxu0 %v86_v22 }
  0x16   :  { %360 = vmatprep.subr.msk.bf16.mxu0 %vm72_vm0, %v42_v23 }
  0x1d   :  { %338 = vmatpush3.bf16.xpose.msra.mxu0 %v89_v24 }
  0x24   :  { %340 = vmatmul.mubr.msk.bf16.vlgmr.msra.gmra.mrb[0].mxu0 %vm72_vm0, %v368_v25 }
  0x82   :  { %v62_v28 = vpop.permute.xlu1 %61 }
  0x83   :  { %v52_v27 = vpop.permute.xlu0 %51 }
  0x86   :  { %v154_v47 = vpop.permute.xlu1 %153 }
  0x87   :  { %v57_v34 = vpop.permute.xlu0 %56 }
  0x8a   :  { %v225_v62 = vpop.permute.xlu1 %224 }
  0x8b   :  { %v159_v51 = vpop.permute.xlu0 %158 }
  0x8f   :  { %v281_v6 = vpop.permute.xlu0 %280 }
  0xf7   :  { %v341_v29 = vpop.f32.mrb[0].mxu0 }
  0xf8   :  { %v134_v30 = vadd.f32 %v341_v29, %v62_v28  ;;  %v125_v31 = vpop.f32.mrb[1].mxu0 }
  0xf9   :  { %v126_v32 = vadd.f32 %v125_v31, %v52_v27  ;;  %v342_v33 = vpop.f32.mrb[2].mxu0 }
  0xfa   :  { %v141_v35 = vmul.f32 0.01, %v134_v30  ;;  %v128_v36 = vpop.f32.mrb[3].mxu0 }
  0xfb   :  { %v139_v37 = vmul.f32 0.01, %v126_v32  ;;  %v129_v38 = vadd.f32 %v128_v36, %v57_v34 }
  0xfc   :  { %v144_v40 = vmax.f32 %v134_v30, %v141_v35 }
  0xfd   :  { %v140_v39 = vmul.f32 0.01, %v129_v38  ;;  %v142_v41 = vmax.f32 %v126_v32, %v139_v37 }
  0xfe   :  { %v148_v44 = vpack.c.bf16 %v144_v40, %v144_v40 }
  0xff   :  { %v143_v42 = vmax.f32 %v129_v38, %v140_v39 }
 0x100   :  { %v172_v45 = vsel %vm170_vm2, %v148_v44, 0 }
 0x101   :  { %v147_v43 = vpack.c.bf16 %v143_v42, %v142_v41 }
 0x103   :  { %344 = vmatpush3.bf16.msra.mxu1 %v147_v43 }
 0x104   :  { %345 = vmatprep.subr.bf16.mxu1 %v399_v26 }
 0x107   :  { %346 = vmatpush3.bf16.msra.mxu1 %v172_v45 }
 0x108   :  { %351 = vmatprep.subr.bf16.mxu1 %v399_v26 }
 0x10a   :  { %348 = vmatmul.mubr.msk.bf16.vlgmr.msra.gmra.mrb[0].mxu1 %vm166_vm3, %v369_v46 }
 0x10b   :  { %353 = vmatprep.mubr.msk.bf16.mxu1 %vm400_vm1, %v399_v26 }
 0x1dd   :  { %v208_v48 = vpop.f32.mrb[0].mxu1 }
 0x1de   :  { %v209_v49 = vadd.f32 %v208_v48, %v154_v47  ;;  %v349_v50 = vpop.f32.mrb[1].mxu1 }
 0x1df   :  { %v211_v52 = vpop.f32.mrb[2].mxu1 }
 0x1e0   :  { %v215_v53 = vmul.f32 0.01, %v209_v49  ;;  %v212_v54 = vadd.f32 %v211_v52, %v159_v51  ;;  %v350_v55 = vpop.f32.mrb[3].mxu1 }
 0x1e2   :  { %v216_v56 = vmul.f32 0.01, %v212_v54  ;;  %v217_v57 = vmax.f32 %v209_v49, %v215_v53 }
 0x1e4   :  { %v218_v58 = vmax.f32 %v212_v54, %v216_v56 }
 0x1e6   :  { %v220_v59 = vpack.c.bf16 %v218_v58, %v217_v57 }
 0x1e8   :  { %v233_v60 = vsel %vm231_vm4, %v220_v59, 0 }
 0x1e9   :  { %352 = vmatpush3.bf16.msra.mxu1 %v233_v60 }
 0x1ec   :  { %354 = vmatmul.mubr.msk.bf16.vlgmr.msra.gmra.mrb[4].mxu1 %vm227_vm5, %v219_v61 }
 0x2bf   :  { %v269_v63 = vpop.f32.mrb[4].mxu1 }
 0x2c0   :  { %v270_v0 = vadd.f32 %v269_v63, %v225_v62  ;;  %v355_v1 = vpop.f32.mrb[5].mxu1 }
 0x2c1   :  { %v272_v2 = vpop.f32.mrb[6].mxu1 }
 0x2c2   :  { %v275_v3 = vmul.f32 0.01, %v270_v0  ;;  %v356_v4 = vpop.f32.mrb[7].mxu1 }
 0x2c4   :  { %v276_v5 = vmax.f32 %v270_v0, %v275_v3 }
 0x2c6   :  { %v283_v7 = vmul.f32 %v281_v6, %v276_v5 }
 0x2c8   :  { %v285_v8 = vsel %vm284_vm6, %v283_v7, 0.0 }
 0x2c9   :  { %v286_v9 = vrot.slane %v285_v8, 4 }
 0x2cb   :  { %v287_v10 = vadd.f32 %v286_v9, %v285_v8 }
 0x2cd   :  { %v288_v11 = vrot.slane %v287_v10, 2 }
 0x2cf   :  { %v289_v12 = vadd.f32 %v288_v11, %v287_v10 }
 0x2d1   :  { %v290_v13 = vrot.slane %v289_v12, 1 }
 0x2d3   :  { %v291_v14 = vadd.f32 %v290_v13, %v289_v12 }
 0x2d5   :  { %v292_v15 = vsub.f32 0.0, %v291_v14 }
 0x2d7   :  { %v293_v16 = vmul.f32 1.442695, %v292_v15 }
 0x2d9   :  { %370 = vpow2.f32 %v293_v16 }
 0x2e3   :  { %v371_v17 = vpop.eup %370 }
 0x2e4   :  { %v295_v18 = vadd.f32 1.0, %v371_v17 }
 0x2e6   :  { %372 = vrcp.f32 %v295_v18 }
 0x2f0   :  { %v373_v19 = vpop.eup %372 }
 0x2f1   :  { %298 = vst.msk [vmem:[#allocation2] sm:$0x1] %vm297_vm7, %v373_v19 }
 0x2f2   :  { %385 = shalt.err (!%p382_p4)
}
 0x2f3   :  { %s386_s19 = scalar_lea.hbm %s536_s8, 16 }
 0x2f4   :  { %p387_p5 = scmp.ne.s32.totalorder %s536_s8, %s386_s19  ;;  %p390_p6 = scmp.lt.u32.totalorder %s386_s19, %s536_s8 }
 0x2f6   :  { %p392_p7 = pnand %p390_p6, %p387_p5 }
 0x2f8   :  { %395 = shalt.err (!%p392_p7)
}
 0x2f9   :  { %308 = dma.vmem_to_hbm [thread:$0]  %s306_s14, 16, %s536_s8, [#allocation3]  }
 0x2fa   :  { %396 = dma.done.wait [#allocation3], 16  }
 0x2fb   :  { %397 = vsyncadd [#allocation3], 4294967280 }
 0x2fc   :  { %312 = vsyncpa [#allocation3], 1 }

</bundles_post_ra>
